<compile_context>
chip_gen: v7x
topology: tpu7x:2x2x1
jax: 0.10.0
libtpu: 0.0.40
codegen_flags: <defaults>
</compile_context>

<pallas_src>
import functools

import jax
import jax.numpy as jnp
from jax import lax
from jax.experimental import pallas as pl
from jax.experimental.pallas import tpu as pltpu


def _round_up(x, m):
    return ((x + m - 1) // m) * m


def _cvi_kernel(x_ref, w_ref, o_ref, *, out_rows, ws, after):
    # x_ref: (rows_p, c4p)       row-flattened space-to-depth input (one image)
    # w_ref: (4*c4p, cout_tile)  fused sub-pixel weight matrix
    # o_ref: (out_rows, cout_tile)
    x = x_ref[...]

    # Per-tile im2col in VMEM: the four (dh, dw) shifted row windows, concatenated
    # along the (lane-aligned, 128-multiple) channel axis -> one MXU matmul.
    lhs = jnp.concatenate(
        [x[0:out_rows, :],
         x[1:out_rows + 1, :],
         x[ws:ws + out_rows, :],
         x[ws + 1:ws + 1 + out_rows, :]],
        axis=-1)
    acc = jnp.dot(lhs, w_ref[...], preferred_element_type=jnp.float32)

    if after == "Tanh":
        acc = jnp.tanh(acc)
    elif after == "sigmoid":
        acc = jax.nn.sigmoid(acc)
    # after == 'BN' (cross-batch statistics) is handled in the wrapper.

    o_ref[...] = acc.astype(o_ref.dtype)


class Cvi:
    """JAX/Pallas equivalent of the PyTorch Cvi module (k=4, s=2, p=1, bias=False)."""

    def __init__(self, key, in_channels, out_channels, before=None, after=None,
                 kernel_size=4, stride=2, padding=1, dilation=1, groups=1, bias=False,
                 compute_dtype=jnp.bfloat16):
        if (kernel_size, stride, padding, dilation, groups, bias) != (4, 2, 1, 1, 1, False):
            # TODO(synk): only the ST-CGAN configuration (k=4, s=2, p=1, no bias) is
            # supported by the space-to-depth kernel.
            raise NotImplementedError("Cvi Pallas kernel supports k=4, s=2, p=1, bias=False only")
        self.cin, self.cout = in_channels, out_channels
        self.before, self.after = before, after
        self.compute_dtype = jnp.dtype(compute_dtype)

        # Lane-dense channel padding: 4*cin_p and cout_p are multiples of 128.
        self.cin_p = _round_up(in_channels, 32)
        self.c4p = 4 * self.cin_p
        self.cout_p = _round_up(out_channels, 128)

        # nn.Conv2d weight (Cout, Cin, kH, kW), gaussian init N(0, 0.02), bias=False.
        self.weight = 0.02 * jax.random.normal(
            key, (out_channels, in_channels, kernel_size, kernel_size), jnp.float32)

        # BatchNorm2d parameters (affine init: gamma=1, beta=0).
        self.bn_gamma = jnp.ones((out_channels,), jnp.float32)
        self.bn_beta = jnp.zeros((out_channels,), jnp.float32)
        self.bn_eps = 1e-5

        # Fused sub-pixel weight matrix (hoisted once):
        #   w_mat[(2*dh+dw)*c4p + (2*ph+pw)*cin_p + ci, co] = weight[co, ci, 2*dh+ph, 2*dw+pw]
        w = jnp.transpose(self.weight, (2, 3, 1, 0))                  # (kh, kw, Ci, Co)
        w = w.reshape(2, 2, 2, 2, in_channels, out_channels)          # (dh, ph, dw, pw, Ci, Co)
        w = jnp.transpose(w, (0, 2, 1, 3, 4, 5))                      # (dh, dw, ph, pw, Ci, Co)
        w = jnp.pad(w, ((0, 0), (0, 0), (0, 0), (0, 0),
                        (0, self.cin_p - in_channels),
                        (0, self.cout_p - out_channels)))
        self.w_mat = w.reshape(4 * self.c4p, self.cout_p).astype(self.compute_dtype)

    def __call__(self, x):                                            # x: NCHW float32
        n, ci, h, w = x.shape
        assert ci == self.cin and h % 2 == 0 and w % 2 == 0
        ho, wo = h // 2, w // 2
        ws = wo + 1
        out_rows = ho * ws
        rows_p = (ho + 2) * ws                       # extra zero rows cover shifted reads
        c4p, cout_p = self.c4p, self.cout_p
        cdt = self.compute_dtype
        itm = cdt.itemsize

        # 'before' activation in f32 (fuses with the relayout; bf16-path faithful).
        if self.before == "ReLU":
            x = jnp.maximum(x, 0.0)
        elif self.before == "LReLU":
            x = jnp.where(x > 0, x, 0.2 * x)

        # Single fused relayout: NHWC -> pad (conv p=1, +2 extra bottom rows for the
        # in-kernel +ws/+ws+1 shifts, channel pad to 128-multiple) -> space-to-depth
        # -> row-flatten -> cast to compute dtype.  No separate halo array / pad pass.
        xp = jnp.transpose(x, (0, 2, 3, 1))
        xp = jnp.pad(xp, ((0, 0), (1, 3), (1, 1), (0, self.cin_p - ci)))
        xs = xp.reshape(n, ho + 2, 2, ws, 2, self.cin_p)
        xsf = jnp.transpose(xs, (0, 1, 3, 2, 4, 5)).reshape(n, rows_p, c4p).astype(cdt)

        # Cout split: up to 2 lane-dense tiles so both v7x TensorCores get work at
        # batch 1; the input block stays VMEM-resident across the inner axis.
        n_ct = 2 if (cout_p >= 256 and cout_p % 256 == 0) else 1
        ct = cout_p // n_ct

        # Generation-aware VMEM budget (double-buffered blocks + in-kernel im2col).
        est = (2 * rows_p * c4p * itm            # input block x2
               + 2 * 4 * c4p * ct * itm          # weight block x2
               + 2 * out_rows * ct * itm         # output block x2
               + out_rows * 4 * c4p * itm        # im2col lhs
               + out_rows * ct * 4)              # f32 accumulator
        try:
            vmem_cap = int(getattr(pltpu.get_tpu_info(), "vmem_capacity_bytes",
                                   64 * 1024 * 1024))
        except Exception:
            vmem_cap = 64 * 1024 * 1024
        vmem_limit = int(min(int(0.75 * vmem_cap), max(2 * est, 16 * 1024 * 1024)))
        if est > vmem_limit:
            # TODO(synk): add a halo-free row-tiled path (overlapping element-offset
            # windows) for images too large for a whole-image VMEM tile.
            raise NotImplementedError("Cvi: image too large for whole-image VMEM tile")

        cost = pl.CostEstimate(
            flops=2 * n * out_rows * (4 * c4p) * cout_p,
            transcendentals=(n * out_rows * cout_p
                             if self.after in ("Tanh", "sigmoid") else 0),
            bytes_accessed=(xsf.size * itm + self.w_mat.size * itm
                            + n * out_rows * cout_p * itm))

        kern = functools.partial(_cvi_kernel, out_rows=out_rows, ws=ws, after=self.after)
        out = pl.pallas_call(
            kern,
            out_shape=jax.ShapeDtypeStruct((n, out_rows, cout_p), cdt),
            grid_spec=pltpu.PrefetchScalarGridSpec(
                num_scalar_prefetch=0,
                grid=(n, n_ct),
                in_specs=[
                    pl.BlockSpec((pl.Squeezed(), rows_p, c4p), lambda b, j: (b, 0, 0)),
                    pl.BlockSpec((4 * c4p, ct), lambda b, j: (0, j)),
                ],
                out_specs=pl.BlockSpec((pl.Squeezed(), out_rows, ct),
                                       lambda b, j: (b, 0, j)),
            ),
            compiler_params=pltpu.CompilerParams(
                dimension_semantics=("parallel", "parallel"),
                vmem_limit_bytes=vmem_limit),
            cost_estimate=cost,
        )(xsf, self.w_mat)

        # Drop the junk column / channel padding, back to NCHW, f32.
        # TODO(synk): for multi-layer stacks, keep activations in the padded NHWC /
        # s2d layout between Cvi layers to avoid the per-layer NCHW<->NHWC relayout.
        y = out.reshape(n, ho, ws, cout_p)[:, :, :wo, :self.cout]
        y = jnp.transpose(y, (0, 3, 1, 2)).astype(jnp.float32)

        if self.after == "BN":
            # TODO(synk): training-mode BatchNorm2d (cross-batch statistics) applied
            # outside the kernel; running-stat tracking / eval mode not modeled.
            m = jnp.mean(y, axis=(0, 2, 3), keepdims=True)
            v = jnp.var(y, axis=(0, 2, 3), keepdims=True)
            y = (y - m) * lax.rsqrt(v + self.bn_eps)
            y = y * self.bn_gamma[None, :, None, None] + self.bn_beta[None, :, None, None]
        return y


def _reference(x, mod):
    # Pure-JAX reference with PyTorch Conv2d semantics.
    if mod.before == "ReLU":
        x = jnp.maximum(x, 0.0)
    elif mod.before == "LReLU":
        x = jnp.where(x > 0, x, 0.2 * x)
    y = lax.conv_general_dilated(
        x, mod.weight, window_strides=(2, 2), padding=[(1, 1), (1, 1)],
        dimension_numbers=("NCHW", "OIHW", "NCHW"), precision=lax.Precision.HIGHEST)
    if mod.after == "Tanh":
        y = jnp.tanh(y)
    elif mod.after == "sigmoid":
        y = jax.nn.sigmoid(y)
    elif mod.after == "BN":
        m = jnp.mean(y, axis=(0, 2, 3), keepdims=True)
        v = jnp.var(y, axis=(0, 2, 3), keepdims=True)
        y = (y - m) * lax.rsqrt(v + mod.bn_eps)
        y = y * mod.bn_gamma[None, :, None, None] + mod.bn_beta[None, :, None, None]
    return y


if __name__ == "__main__":
    key = jax.random.PRNGKey(0)
    k_w, k_x = jax.random.split(key)

    N, Cin, Cout, H, W = 2, 4, 8, 16, 16
    x = jax.random.normal(k_x, (N, Cin, H, W), jnp.float32)

    # f32 compute path: LReLU -> conv -> tanh (strict numerical check).
    mod_f32 = Cvi(k_w, Cin, Cout, before="LReLU", after="Tanh", compute_dtype=jnp.float32)
    y = jax.block_until_ready(mod_f32(x))
    y_ref = _reference(x, mod_f32)
    assert y.shape == (N, Cout, H // 2, W // 2), y.shape
    err = float(jnp.max(jnp.abs(y - y_ref)))
    assert err < 5e-4, err

    # bf16 compute path (MXU-native operands, f32 accumulation), same weights.
    mod_bf16 = Cvi(k_w, Cin, Cout, before="LReLU", after="Tanh", compute_dtype=jnp.bfloat16)
    y16 = jax.block_until_ready(mod_bf16(x))
    err16 = float(jnp.max(jnp.abs(y16 - y_ref)))
    assert err16 < 2e-2, err16

    # ReLU -> conv -> sigmoid.
    mod_sig = Cvi(jax.random.fold_in(k_w, 1), Cin, Cout, before="ReLU", after="sigmoid",
                  compute_dtype=jnp.float32)
    ys = jax.block_until_ready(mod_sig(x))
    errs = float(jnp.max(jnp.abs(ys - _reference(x, mod_sig))))
    assert errs < 5e-4, errs

    # conv -> BatchNorm (batch statistics).
    mod_bn = Cvi(jax.random.fold_in(k_w, 2), Cin, Cout, before=None, after="BN",
                 compute_dtype=jnp.float32)
    yb = jax.block_until_ready(mod_bn(x))
    errb = float(jnp.max(jnp.abs(yb - _reference(x, mod_bn))))
    assert errb < 2e-3, errb

    print("KERNEL_OK")
</pallas_src>

<mosaic_0001>
module attributes {stable_mosaic.version = 11 : i64} {
  func.func @_cvi_kernel(%arg0: i32, %arg1: i32, %arg2: memref<1x90x128xf32, #tpu.memory_space<vmem>>, %arg3: memref<512x128xf32, #tpu.memory_space<vmem>>, %arg4: memref<1x72x128xf32, #tpu.memory_space<vmem>>) attributes {dimension_semantics = [#tpu.dimension_semantics<parallel>, #tpu.dimension_semantics<parallel>], iteration_bounds = array<i64: 2, 1>, scalar_prefetch = 0 : i64, scratch_operands = 0 : i64, tpu.core_type = #tpu.core_type<tc>, window_params = [{transform_indices = @transform_0, window_bounds = array<i64: 1, 90, 128>}, {transform_indices = @transform_1, window_bounds = array<i64: 512, 128>}, {transform_indices = @transform_2, window_bounds = array<i64: 1, 72, 128>}]} {
    %c0 = arith.constant 0 : index
    %c0_0 = arith.constant 0 : index
    %c0_1 = arith.constant 0 : index
    %0 = vector.load %arg2[%c0, %c0_0, %c0_1] : memref<1x90x128xf32, #tpu.memory_space<vmem>>, vector<1x90x128xf32>
    %1 = vector.shape_cast %0 : vector<1x90x128xf32> to vector<90x128xf32>
    %2 = vector.extract_strided_slice %1 {offsets = [0, 0], sizes = [72, 128], strides = [1, 1]} : vector<90x128xf32> to vector<72x128xf32>
    %3 = vector.extract_strided_slice %1 {offsets = [1, 0], sizes = [72, 128], strides = [1, 1]} : vector<90x128xf32> to vector<72x128xf32>
    %4 = vector.extract_strided_slice %1 {offsets = [9, 0], sizes = [72, 128], strides = [1, 1]} : vector<90x128xf32> to vector<72x128xf32>
    %5 = vector.extract_strided_slice %1 {offsets = [10, 0], sizes = [72, 128], strides = [1, 1]} : vector<90x128xf32> to vector<72x128xf32>
    %6 = tpu.concatenate %2, %3, %4, %5 in 1 : vector<72x128xf32>, vector<72x128xf32>, vector<72x128xf32>, vector<72x128xf32> -> vector<72x512xf32>
    %c0_2 = arith.constant 0 : index
    %c0_3 = arith.constant 0 : index
    %7 = vector.load %arg3[%c0_2, %c0_3] : memref<512x128xf32, #tpu.memory_space<vmem>>, vector<512x128xf32>
    %cst = arith.constant dense<0.000000e+00> : vector<72x128xf32>
    %8 = tpu.matmul %6, %7, %cst {dimension_numbers = #tpu.dot_dimension_numbers<[1], [0], [0], [1], [0, 0, 1, 1], [], []>} : vector<72x512xf32>, vector<512x128xf32>, vector<72x128xf32> -> vector<72x128xf32>
    %9 = math.tanh %8 : vector<72x128xf32>
    %c0_4 = arith.constant 0 : index
    %c0_5 = arith.constant 0 : index
    %c0_6 = arith.constant 0 : index
    %10 = vector.load %arg4[%c0_4, %c0_5, %c0_6] : memref<1x72x128xf32, #tpu.memory_space<vmem>>, vector<1x72x128xf32>
    %11 = vector.shape_cast %10 : vector<1x72x128xf32> to vector<72x128xf32>
    %12 = vector.shape_cast %9 : vector<72x128xf32> to vector<1x72x128xf32>
    tpu.vector_store %arg4[%c0_4, %c0_5, %c0_6], %12 {strides = array<i32>} : memref<1x72x128xf32, #tpu.memory_space<vmem>>, vector<1x72x128xf32>,
    return
  }
  func.func @transform_0(%arg0: i32, %arg1: i32) -> (i32, i32, i32) {
    %c0_i32 = arith.constant 0 : i32
    %c0_i32_0 = arith.constant 0 : i32
    %c0_i32_1 = arith.constant 0 : i32
    return %arg0, %c0_i32, %c0_i32_0 : i32, i32, i32
  }
  func.func @transform_1(%arg0: i32, %arg1: i32) -> (i32, i32) {
    %c0_i32 = arith.constant 0 : i32
    %c0_i32_0 = arith.constant 0 : i32
    return %c0_i32, %arg1 : i32, i32
  }
  func.func @transform_2(%arg0: i32, %arg1: i32) -> (i32, i32, i32) {
    %c0_i32 = arith.constant 0 : i32
    %c0_i32_0 = arith.constant 0 : i32
    return %arg0, %c0_i32, %arg1 : i32, i32, i32
  }
}

</mosaic_0001>

<bundles_post_ra>
// kernel: tpu_custom_call.1
= control target key start
LH: loop header
LB: loop body
LE: loop exit
PB: predicated region body
PF: predicated region fallthrough
CT: control target
= control target key end

     0   :  { %7 = vsyncpa [#allocation3], 0  ;;  %s1287_s0 = inlined_call_operand.vmem [shape: f32[2,90,128], index: 0, kind: input, shape index: {}]   ;;  %s1288_s1 = inlined_call_operand.hbm [shape: f32[512,128], index: 1, kind: input, shape index: {}]   ;;  %s1289_s2 = inlined_call_operand.hbm [shape: f32[2,72,128], index: 2, kind: output, shape index: {}]  }
   0x1   :  { %8 = vsyncpa [#allocation4], 0 }
   0x2   :  { %10 = vsyncpa [#allocation4 + $0x1], 0  ;;  %s1081_s9 = smov 0   ;;  %s1083_s10 = smov 0  }
   0x3   :  { %s1085_s11 = smov 0   ;;  %s1087_s12 = smov 0  }
   0x4   :  { %s1089_s13 = smov 0   ;;  %s1091_s14 = smov 0  }
   0x5 LB: > { %s664_s15 = sadd.s32 4294967295, %s1058_s14   ;;  %s665_s16 = sadd.s32 4294967294, %s1058_s14   ;;  %s1058_s14 = sphi %s1091_s14, %s16_s14   ;;  %s1054_s13 = sphi %s1089_s13, %s1307_s13   ;;  %s1050_s12 = sphi %s1087_s12, %s1306_s12   ;;  %s1046_s11 = sphi %s1085_s11, %s1305_s11   ;;  %s1042_s10 = sphi %s1083_s10, %s1304_s10   ;;  %s1038_s9 = sphi %s1081_s9, %s1303_s9  }
   0x6   : > { %s28_s17 = sadd.s32 1, %s1054_s13  ;;  %s89_s18 = sadd.s32 1, %s1046_s11 }
   0x7   : > { %p30_p0 = scmp.ge.s32.totalorder %s28_s17, 2  ;;  %p99_p1 = scmp.ne.s32.totalorder %s1046_s11, %s1042_s10 }
   0x8   : > { %p100_p2 = scmp.eq.s32.totalorder %s664_s15, 1  ;;  %p105_p3 = scmp.ne.s32.totalorder %s1042_s10, %s1038_s9 }
   0x9   : > { %s1309_s17 = smov (%p30_p0, %s28_s17), 0  ;;  %p106_p5 = scmp.eq.s32.totalorder %s665_s16, 1 }
   0xa   : > { %p1121_p4 = por %p100_p2, %p99_p1  ;;  %s84_s20 = ssub.s32 %s1054_s13, %s1309_s17 }
   0xb   : > { %p666_p6 = scmp.ge.s32.totalorder %s1058_s14, 1  ;;  %p87_p7 = scmp.eq.s32.totalorder %s84_s20, 0 }
   0xc   : > { %s1294_s19 = scalar_select %p1121_p4, 1, 0 }
   0xd   : > { %p1128_p8 = por %p106_p5, %p105_p3  ;;  %p113_p9 = scmp.lt.s32.totalorder %s1058_s14, 3 }
   0xe   : > { %s1134_s22 = scalar_select %p87_p7, %s1046_s11, %s89_s18  }
   0xf   : > { %s1295_s21 = scalar_select %p1128_p8, 1, 0 }
  0x10   : > { %p1136_p10 = pnand %p666_p6, %p113_p9  ;;  %p1140_p11 = scmp.eq.s32.totalorder %s664_s15, 0 }
  0x11   : > { %s1060_s25 = smov [#allocation2]   ;;  %s948_s30 = scalar_lea.hbm %s1288_s1, 8192 }
  0x12   : > { %s1296_s23 = scalar_select %p1136_p10, 1, 0 }
  0x13   : > { %s1297_s24 = scalar_select %p1140_p11, 1, 0 }
  0x14   : > { %p866_p12 = pneg %p1136_p10  ;;  %s127_s26 = sshll.u32 %s1060_s25, 4  ;;  %s128_s26 = int_to_ptr.vmem [resolvable:$true] %s127_s26 }
  0x15   : > { %p949_p0 = scmp.ne.s32.totalorder %s1288_s1, %s948_s30  ;;  %p955_p5 = scmp.lt.u32.totalorder %s948_s30, %s1288_s1 }
  0x16   : > { %p1148_p13 = pnand %p1140_p11, %p866_p12 }
  0x18   : > { %p950_p1 = pneg %p1148_p13 }
  0x1a   : > { %p951_p2 = pnand %p950_p1, %p949_p0 }
  0x1c   : > { %p952_p3 = pneg %p951_p2 }
  0x1e   : > { %p957_p6 = pnand %p955_p5, %p952_p3 }
  0x20   : > { %960 = shalt.err (!%p957_p6)
}
  0x21   : > { %s961_s7 = scalar_lea.vmem %s128_s26, 8192  ;;  %p969_p8 = scmp.lt.s32.totalorder %s128_s26, %s128_s26 }
  0x22   : > { %p962_p7 = scmp.ne.s32.totalorder %s128_s26, %s961_s7  ;;  %p970_p4 = scmp.lt.s32.totalorder %s961_s7, %s961_s7 }
  0x24   : > { %p964_p9 = pnand %p962_p7, %p950_p1  ;;  %p971_p11 = por %p970_p4, %p969_p8 }
  0x26   : > { %p965_p12 = pneg %p964_p9 }
  0x28   : > { %p972_p10 = pnand %p971_p11, %p965_p12 }
  0x2a   : > { %975 = shalt.err (!%p972_p10)
}
  0x2b   : > { %s1061_s8 = smov 128   ;;  %s1062_s15 = smov 8  }
  0x2c   : > { %869 = dma.hbm_to_vmem [thread:$0]  (!%p1148_p13), %s1288_s1, 8192, %s128_s26, [#allocation3], %s1061_s8, %s1061_s8, %s1062_s15  }
  0x2d   : > { %p1299_p0 = scmp.ne.s32.totalorder %s1296_s23, 0 }
  0x2e   : > { %p1300_p2 = scmp.ne.s32.totalorder (!%p1299_p0), %s1297_s24, 0 }
  0x2f   : > { %151 = sbr.rel (%p1299_p0) target bundleno = 367 (0x16f), region = 28 }
  0x36   : > { %1029 = dma.done.wait (%p1300_p2), [#allocation3], 8192  }
  0x37   : > { %1031 = vsyncadd (%p1300_p2), [#allocation3], 4294959104  ;;  %v277_v0 = vld [vmem:[#allocation2 + $0x80] sm:$0xff]  ;;  %v278_v1 = vld [vmem:[#allocation2 + $0x88] sm:$0xff]  ;;  %p173_p4 = scmp.lt.s32.totalorder %s1050_s12, 1  ;;  %vm199_vm0 = vcmask 1046528  }
  0x38   : > { %v309_v2 = vld [vmem:[#allocation2 + $0x180] sm:$0xff]  ;;  %v793_v3 = vpack.c.bf16 %v278_v1, %v277_v0  ;;  %v310_v4 = vld [vmem:[#allocation2 + $0x188] sm:$0xff]  ;;  %v279_v11 = vld [vmem:[#allocation2 + $0x90] sm:$0xff]  ;;  %vm232_vm1 = vcmask 1045504   ;;  %s170_s27 = sand.u32 1, %s1042_s10   ;;  %s859_s30 = smul.u32 1152, %s1050_s12 }
  0x39   : > { %v261_v5 = vld [vmem:[#allocation2] sm:$0xff]  ;;  %v262_v6 = vld [vmem:[#allocation2 + $0x8] sm:$0xff]  ;;  %v825_v7 = vpack.c.bf16 %v310_v4, %v309_v2  ;;  %v280_v13 = vld [vmem:[#allocation2 + $0x98] sm:$0xff]  ;;  %s1178_s20 = scalar_select %p173_p4, %s1050_s12, 1 }
  0x3a   : > { %v795_v8 = vpack.c.bf16 %v262_v6, %v261_v5  ;;  %v293_v9 = vld [vmem:[#allocation2 + $0x100] sm:$0xff]  ;;  %v294_v10 = vld [vmem:[#allocation2 + $0x108] sm:$0xff]  ;;  %794 = vmatprep.subr.bf16.mxu0 %v793_v3  ;;  %v311_v14 = vld [vmem:[#allocation2 + $0x190] sm:$0xff]  ;;  %v797_v16 = vpack.c.bf16 %v280_v13, %v279_v11  ;;  %s857_s28 = smul.u32 72, %s170_s27  ;;  %s1234_s6 = scalar_lea.hbm %s1289_s2, %s859_s30 }
  0x3b   : > { %v827_v12 = vpack.c.bf16 %v294_v10, %v293_v9  ;;  %v312_v15 = vld [vmem:[#allocation2 + $0x198] sm:$0xff]  ;;  %826 = vmatprep.subr.bf16.mxu1 %v825_v7  ;;  %v263_v18 = vld [vmem:[#allocation2 + $0x10] sm:$0xff]  ;;  %v281_v23 = vld [vmem:[#allocation2 + $0xa0] sm:$0xff]  ;;  %s858_s23 = smul.u32 96, %s1178_s20  ;;  %s1241_s7 = scalar_lea.sflag [#allocation4], %s170_s27 }
  0x3c   : > { %796 = vmatpush3.bf16.msra.mxu0 %v795_v8  ;;  %v829_v17 = vpack.c.bf16 %v312_v15, %v311_v14  ;;  %v264_v19 = vld [vmem:[#allocation2 + $0x18] sm:$0xff]  ;;  %v295_v20 = vld [vmem:[#allocation2 + $0x110] sm:$0xff]  ;;  %v282_v24 = vld [vmem:[#allocation2 + $0xa8] sm:$0xff]  ;;  %s1219_s29 = scalar_lea.vmem [#allocation5], %s857_s28  ;;  %p1301_p10 = scmp.ne.s32.totalorder %s1294_s19, 0 }
  0x3d   : > { %828 = vmatpush3.bf16.msra.mxu1 %v827_v12  ;;  %v799_v21 = vpack.c.bf16 %v264_v19, %v263_v18  ;;  %v296_v22 = vld [vmem:[#allocation2 + $0x118] sm:$0xff]  ;;  %798 = vmatprep.subr.bf16.mxu0 %v797_v16  ;;  %v801_v26 = vpack.c.bf16 %v282_v24, %v281_v23  ;;  %v313_v27 = vld [vmem:[#allocation2 + $0x1a0] sm:$0xff]  ;;  %v314_v28 = vld [vmem:[#allocation2 + $0x1a8] sm:$0xff]  ;;  %s1184_s26 = scalar_lea.vmem %s1287_s0, %s858_s23  ;;  %s578_s3 = sshll.u32 %s1219_s29, 4  ;;  %s1236_s3 = int_to_ptr.vmem [resolvable:$true] %s578_s3 }
  0x3e   : > { %830 = vmatprep.subr.bf16.mxu1 %v829_v17  ;;  %v831_v25 = vpack.c.bf16 %v296_v22, %v295_v20  ;;  %v265_v29 = vld [vmem:[#allocation2 + $0x20] sm:$0xff]  ;;  %v833_v30 = vpack.c.bf16 %v314_v28, %v313_v27  ;;  %v266_v31 = vld [vmem:[#allocation2 + $0x28] sm:$0xff]  ;;  %v283_v35 = vld [vmem:[#allocation2 + $0xb0] sm:$0xff]  ;;  %s976_s8 = scalar_lea.vmem %s1236_s3, 1152  ;;  %s1063_s12 = smov [#allocation5]  }
  0x3f   : > { %v297_v32 = vld [vmem:[#allocation2 + $0x120] sm:$0xff]  ;;  %v298_v33 = vld [vmem:[#allocation2 + $0x128] sm:$0xff]  ;;  %v803_v34 = vpack.c.bf16 %v266_v31, %v265_v29  ;;  %v284_v36 = vld [vmem:[#allocation2 + $0xb8] sm:$0xff]  ;;  %p977_p8 = scmp.ne.s32.totalorder %s1236_s3, %s976_s8  ;;  %s980_s15 = sshll.u32 %s1063_s12, 4  ;;  %s981_s15 = int_to_ptr.vmem [resolvable:$false] %s980_s15 }
  0x40   : > { %800 = vmatpush3.bf16.msra.mxu0 %v799_v21  ;;  %v315_v37 = vld [vmem:[#allocation2 + $0x1b0] sm:$0xff]  ;;  %v835_v38 = vpack.c.bf16 %v298_v33, %v297_v32  ;;  %v805_v39 = vpack.c.bf16 %v284_v36, %v283_v35  ;;  %v316_v40 = vld [vmem:[#allocation2 + $0x1b8] sm:$0xff]  ;;  %v285_v46 = vld [vmem:[#allocation2 + $0xc0] sm:$0xff]  ;;  %s982_s16 = scalar_lea.vmem %s981_s15, 2304  ;;  %p983_p1 = scmp.lt.s32.totalorder %s1236_s3, %s981_s15 }
  0x41   : > { %832 = vmatpush3.bf16.msra.mxu1 %v831_v25  ;;  %802 = vmatprep.subr.bf16.mxu0 %v801_v26  ;;  %v267_v41 = vld [vmem:[#allocation2 + $0x30] sm:$0xff]  ;;  %v268_v42 = vld [vmem:[#allocation2 + $0x38] sm:$0xff]  ;;  %v837_v43 = vpack.c.bf16 %v316_v40, %v315_v37  ;;  %v286_v47 = vld [vmem:[#allocation2 + $0xc8] sm:$0xff]  ;;  %p978_p11 = pnand %p977_p8, %p1301_p10  ;;  %p984_p3 = scmp.lt.s32.totalorder %s982_s16, %s976_s8 }
  0x42   : > { %834 = vmatprep.subr.bf16.mxu1 %v833_v30  ;;  %v299_v44 = vld [vmem:[#allocation2 + $0x130] sm:$0xff]  ;;  %v300_v45 = vld [vmem:[#allocation2 + $0x138] sm:$0xff]  ;;  %v317_v48 = vld [vmem:[#allocation2 + $0x1c0] sm:$0xff]  ;;  %v807_v50 = vpack.c.bf16 %v268_v42, %v267_v41  ;;  %v809_v52 = vpack.c.bf16 %v286_v47, %v285_v46 }
  0x43   : > { %v318_v49 = vld [vmem:[#allocation2 + $0x1c8] sm:$0xff]  ;;  %v839_v51 = vpack.c.bf16 %v300_v45, %v299_v44  ;;  %v269_v53 = vld [vmem:[#allocation2 + $0x40] sm:$0xff]  ;;  %v287_v58 = vld [vmem:[#allocation2 + $0xd0] sm:$0xff]  ;;  %p979_p13 = pneg %p978_p11  ;;  %p985_p5 = por %p984_p3, %p983_p1 }
  0x44   : > { %804 = vmatpush3.bf16.msra.mxu0 %v803_v34  ;;  %v270_v54 = vld [vmem:[#allocation2 + $0x48] sm:$0xff]  ;;  %v301_v55 = vld [vmem:[#allocation2 + $0x140] sm:$0xff]  ;;  %v841_v56 = vpack.c.bf16 %v318_v49, %v317_v48  ;;  %v288_v59 = vld [vmem:[#allocation2 + $0xd8] sm:$0xff] }
  0x45   : > { %836 = vmatpush3.bf16.msra.mxu1 %v835_v38  ;;  %806 = vmatprep.subr.bf16.mxu0 %v805_v39  ;;  %v302_v57 = vld [vmem:[#allocation2 + $0x148] sm:$0xff]  ;;  %v319_v60 = vld [vmem:[#allocation2 + $0x1d0] sm:$0xff]  ;;  %v320_v61 = vld [vmem:[#allocation2 + $0x1d8] sm:$0xff]  ;;  %v811_v62 = vpack.c.bf16 %v270_v54, %v269_v53  ;;  %v813_v0 = vpack.c.bf16 %v288_v59, %v287_v58  ;;  %p986_p6 = pnand %p985_p5, %p979_p13 }
  0x46   : > { %838 = vmatprep.subr.bf16.mxu1 %v837_v43  ;;  %v843_v63 = vpack.c.bf16 %v302_v57, %v301_v55  ;;  %v271_v1 = vld [vmem:[#allocation2 + $0x50] sm:$0xff]  ;;  %v272_v2 = vld [vmem:[#allocation2 + $0x58] sm:$0xff]  ;;  %v845_v4 = vpack.c.bf16 %v320_v61, %v319_v60  ;;  %v289_v6 = vld [vmem:[#allocation2 + $0xe0] sm:$0xff] }
  0x47   : > { %v303_v3 = vld [vmem:[#allocation2 + $0x150] sm:$0xff]  ;;  %v304_v5 = vld [vmem:[#allocation2 + $0x158] sm:$0xff]  ;;  %v290_v7 = vld [vmem:[#allocation2 + $0xe8] sm:$0xff]  ;;  %v815_v10 = vpack.c.bf16 %v272_v2, %v271_v1 }
  0x48   : > { %808 = vmatpush3.bf16.msra.mxu0 %v807_v50  ;;  %v321_v8 = vld [vmem:[#allocation2 + $0x1e0] sm:$0xff]  ;;  %v322_v9 = vld [vmem:[#allocation2 + $0x1e8] sm:$0xff]  ;;  %v847_v14 = vpack.c.bf16 %v304_v5, %v303_v3  ;;  %v817_v15 = vpack.c.bf16 %v290_v7, %v289_v6  ;;  %v291_v20 = vld [vmem:[#allocation2 + $0xf0] sm:$0xff] }
  0x49   : > { %840 = vmatpush3.bf16.msra.mxu1 %v839_v51  ;;  %810 = vmatprep.subr.bf16.mxu0 %v809_v52  ;;  %v273_v11 = vld [vmem:[#allocation2 + $0x60] sm:$0xff]  ;;  %v274_v12 = vld [vmem:[#allocation2 + $0x68] sm:$0xff]  ;;  %v849_v19 = vpack.c.bf16 %v322_v9, %v321_v8  ;;  %v292_v21 = vld [vmem:[#allocation2 + $0xf8] sm:$0xff] }
  0x4a   : > { %842 = vmatprep.subr.bf16.mxu1 %v841_v56  ;;  %v305_v13 = vld [vmem:[#allocation2 + $0x160] sm:$0xff]  ;;  %v306_v16 = vld [vmem:[#allocation2 + $0x168] sm:$0xff]  ;;  %v180_v24 = vld [vmem:[%s1184_s26 + $0x10] sm:$0xff]  ;;  %v819_v29 = vpack.c.bf16 %v274_v12, %v273_v11  ;;  %v821_v32 = vpack.c.bf16 %v292_v21, %v291_v20 }
  0x4b   : > { %v178_v17 = vld [vmem:[%s1184_s26] sm:$0xff]  ;;  %v179_v18 = vld [vmem:[%s1184_s26 + $0x8] sm:$0xff]  ;;  %v323_v26 = vld [vmem:[#allocation2 + $0x1f0] sm:$0xff]  ;;  %v234_v28 = vrot.slane %v180_v24, 2  ;;  %v851_v31 = vpack.c.bf16 %v306_v16, %v305_v13  ;;  %v203_v42 = vrot.slane %v180_v24, 1 }
  0x4c   : > { %812 = vmatpush3.bf16.msra.mxu0 %v811_v62  ;;  %v200_v22 = vrot.slane %v178_v17, 1  ;;  %v201_v23 = vrot.slane %v179_v18, 1  ;;  %v233_v25 = vrot.slane %v179_v18, 2  ;;  %v324_v27 = vld [vmem:[#allocation2 + $0x1f8] sm:$0xff]  ;;  %v275_v33 = vld [vmem:[#allocation2 + $0x70] sm:$0xff]  ;;  %v182_v44 = vld [vmem:[%s1184_s26 + $0x20] sm:$0xff] }
  0x4d   : > { %844 = vmatpush3.bf16.msra.mxu1 %v843_v63  ;;  %814 = vmatprep.subr.bf16.mxu0 %v813_v0  ;;  %v276_v34 = vld [vmem:[#allocation2 + $0x78] sm:$0xff]  ;;  %v853_v36 = vpack.c.bf16 %v324_v27, %v323_v26  ;;  %v307_v37 = vld [vmem:[#allocation2 + $0x170] sm:$0xff]  ;;  %v238_v48 = vrot.slane %v182_v44, 2  ;;  %v183_v49 = vld [vmem:[%s1184_s26 + $0x28] sm:$0xff]  ;;  %v207_v51 = vrot.slane %v182_v44, 1 }
  0x4e   : > { %846 = vmatprep.subr.bf16.mxu1 %v845_v4  ;;  %v202_v30 = vsel %vm199_vm0, %v200_v22, %v201_v23  ;;  %v235_v35 = vsel %vm232_vm1, %v233_v25, %v234_v28  ;;  %v308_v38 = vld [vmem:[#allocation2 + $0x178] sm:$0xff]  ;;  %v823_v40 = vpack.c.bf16 %v276_v34, %v275_v33  ;;  %v204_v45 = vsel %vm199_vm0, %v201_v23, %v203_v42  ;;  %v184_v54 = vld [vmem:[%s1184_s26 + $0x30] sm:$0xff]  ;;  %v186_v0 = vld [vmem:[%s1184_s26 + $0x40] sm:$0xff] }
  0x4f   : > { %389 = vmatprep.mubr.f32.mxu0 %v202_v30  ;;  %499 = vmatprep.mubr.f32.mxu1 %v235_v35  ;;  %v181_v39 = vld [vmem:[%s1184_s26 + $0x18] sm:$0xff]  ;;  %v855_v41 = vpack.c.bf16 %v308_v38, %v307_v37  ;;  %v240_v53 = vrot.slane %v183_v49, 2  ;;  %v209_v56 = vrot.slane %v183_v49, 1  ;;  %v242_v58 = vrot.slane %v184_v54, 2  ;;  %v187_v5 = vld [vmem:[%s1184_s26 + $0x48] sm:$0xff] }
  0x50   : > { %816 = vmatpush3.bf16.msra.mxu0 %v815_v10  ;;  %v236_v43 = vrot.slane %v181_v39, 2  ;;  %v205_v46 = vrot.slane %v181_v39, 1  ;;  %v185_v59 = vld [vmem:[%s1184_s26 + $0x38] sm:$0xff]  ;;  %v211_v61 = vrot.slane %v184_v54, 1  ;;  %v246_v4 = vrot.slane %v186_v0, 2  ;;  %v188_v10 = vld [vmem:[%s1184_s26 + $0x50] sm:$0xff] }
  0x51   : > { %848 = vmatpush3.bf16.msra.mxu1 %v847_v14  ;;  %818 = vmatprep.subr.bf16.mxu0 %v817_v15  ;;  %v241_v57 = vsel %vm232_vm1, %v238_v48, %v240_v53  ;;  %v210_v60 = vsel %vm199_vm0, %v207_v51, %v209_v56  ;;  %v243_v62 = vsel %vm232_vm1, %v240_v53, %v242_v58  ;;  %v244_v63 = vrot.slane %v185_v59, 2 }
  0x52   : > { %850 = vmatprep.subr.bf16.mxu1 %v849_v19  ;;  %v237_v47 = vsel %vm232_vm1, %v234_v28, %v236_v43  ;;  %v206_v50 = vsel %vm199_vm0, %v203_v42, %v205_v46  ;;  %v239_v52 = vsel %vm232_vm1, %v236_v43, %v238_v48  ;;  %v208_v55 = vsel %vm199_vm0, %v205_v46, %v207_v51 }
  0x53   : > { %v212_v1 = vsel %vm199_vm0, %v209_v56, %v211_v61  ;;  %v213_v2 = vrot.slane %v185_v59, 1  ;;  %v245_v3 = vsel %vm232_vm1, %v242_v58, %v244_v63  ;;  %v215_v7 = vrot.slane %v186_v0, 1 }
  0x54   : > { %820 = vmatpush3.bf16.msra.mxu0 %v819_v29  ;;  %v247_v8 = vsel %vm232_vm1, %v244_v63, %v246_v4  ;;  %v248_v9 = vrot.slane %v187_v5, 2  ;;  %v217_v12 = vrot.slane %v187_v5, 1  ;;  %v250_v14 = vrot.slane %v188_v10, 2 }
  0x55   : > { %852 = vmatpush3.bf16.msra.mxu1 %v851_v31  ;;  %822 = vmatprep.subr.bf16.mxu0 %v821_v32  ;;  %v214_v6 = vsel %vm199_vm0, %v211_v61, %v213_v2  ;;  %v216_v11 = vsel %vm199_vm0, %v213_v2, %v215_v7  ;;  %v229_v16 = vrot.slane %v188_v10, 1 }
  0x56   : > { %854 = vmatprep.subr.bf16.mxu1 %v853_v36  ;;  %v249_v13 = vsel %vm232_vm1, %v246_v4, %v248_v9  ;;  %v218_v15 = vsel %vm199_vm0, %v215_v7, %v217_v12 }
  0x58   : > { %824 = vmatpush3.bf16.msra.mxu0 %v823_v40 }
  0x59   : > { %856 = vmatpush3.bf16.msra.mxu1 %v855_v41 }
  0x5b   : > { %390 = vmatmul.mubr.f32.vlgmr.msra.gmra.mrb[0].mxu0 %v178_v17  ;;  %v251_v17 = vsel %vm232_vm1, %v248_v9, %v250_v14 }
  0x5c   : > { %500 = vmatmul.mubr.f32.vlgmr.msra.gmra.mrb[0].mxu1 %v204_v45  ;;  %394 = vmatprep.mubr.f32.mxu0 %v204_v45 }
  0x5d   : > { %504 = vmatprep.mubr.f32.mxu1 %v237_v47 }
  0x5f   : > { %395 = vmatmul.mubr.f32.gmra.mrb[2].mxu0 %v179_v18  ;;  %v230_v18 = vsel %vm199_vm0, %v217_v12, %v229_v16 }
  0x60   : > { %505 = vmatmul.mubr.f32.gmra.mrb[2].mxu1 %v206_v50  ;;  %399 = vmatprep.mubr.f32.mxu0 %v206_v50 }
  0x61   : > { %509 = vmatprep.mubr.f32.mxu1 %v239_v52 }
  0x63   : > { %400 = vmatmul.mubr.f32.gmra.mrb[4].mxu0 %v180_v24 }
  0x64   : > { %510 = vmatmul.mubr.f32.gmra.mrb[4].mxu1 %v208_v55  ;;  %404 = vmatprep.mubr.f32.mxu0 %v208_v55 }
  0x65   : > { %514 = vmatprep.mubr.f32.mxu1 %v241_v57 }
  0x67   : > { %405 = vmatmul.mubr.f32.gmra.mrb[6].mxu0 %v181_v39 }
  0x68   : > { %515 = vmatmul.mubr.f32.gmra.mrb[6].mxu1 %v210_v60  ;;  %409 = vmatprep.mubr.f32.mxu0 %v210_v60 }
  0x69   : > { %519 = vmatprep.mubr.f32.mxu1 %v243_v62 }
  0x6b   : > { %410 = vmatmul.mubr.f32.gmra.mrb[8].mxu0 %v182_v44 }
  0x6c   : > { %520 = vmatmul.mubr.f32.gmra.mrb[8].mxu1 %v212_v1  ;;  %414 = vmatprep.mubr.f32.mxu0 %v212_v1 }
  0x6d   : > { %524 = vmatprep.mubr.f32.mxu1 %v245_v3 }
  0x6f   : > { %415 = vmatmul.mubr.f32.gmra.mrb[10].mxu0 %v183_v49 }
  0x70   : > { %525 = vmatmul.mubr.f32.gmra.mrb[10].mxu1 %v214_v6  ;;  %419 = vmatprep.mubr.f32.mxu0 %v214_v6 }
  0x71   : > { %529 = vmatprep.mubr.f32.mxu1 %v247_v8 }
  0x73   : > { %420 = vmatmul.mubr.f32.gmra.mrb[12].mxu0 %v184_v54 }
  0x74   : > { %530 = vmatmul.mubr.f32.gmra.mrb[12].mxu1 %v216_v11  ;;  %424 = vmatprep.mubr.f32.mxu0 %v216_v11 }
  0x75   : > { %534 = vmatprep.mubr.f32.mxu1 %v249_v13 }
  0x77   : > { %425 = vmatmul.mubr.f32.gmra.mrb[14].mxu0 %v185_v59 }
  0x78   : > { %535 = vmatmul.mubr.f32.gmra.mrb[14].mxu1 %v218_v15  ;;  %429 = vmatprep.mubr.f32.mxu0 %v218_v15 }
  0x79   : > { %539 = vmatprep.mubr.f32.mxu1 %v251_v17 }
  0x7b   : > { %430 = vmatmul.mubr.f32.gmra.mrb[16].mxu0 %v186_v0 }
  0x7c   : > { %540 = vmatmul.mubr.f32.gmra.mrb[16].mxu1 %v230_v18 }
 0x12e   : > { %v707_v19 = vpop.f32.mrb[0].mxu0 }
 0x12f   : > { %v766_v20 = vpop.f32.mrb[0].mxu1  ;;  %v708_v21 = vpop.f32.mrb[1].mxu0 }
 0x130   : > { %v709_v22 = vadd.f32 %v708_v21, %v707_v19  ;;  %v767_v23 = vpop.f32.mrb[1].mxu1 }
 0x131   : > { %v768_v24 = vadd.f32 %v767_v23, %v766_v20 }
 0x132   : > { %v710_v25 = vpop.f32.mrb[2].mxu0 }
 0x133   : > { %v502_v26 = vadd.f32 %v768_v24, %v709_v22  ;;  %v769_v27 = vpop.f32.mrb[2].mxu1  ;;  %v711_v28 = vpop.f32.mrb[3].mxu0 }
 0x134   : > { %v712_v29 = vadd.f32 %v711_v28, %v710_v25  ;;  %v770_v30 = vpop.f32.mrb[3].mxu1 }
 0x135   : > { %930 = vtanh.f32 %v502_v26  ;;  %v771_v31 = vadd.f32 %v770_v30, %v769_v27 }
 0x136   : > { %v713_v32 = vpop.f32.mrb[4].mxu0 }
 0x137   : > { %v507_v33 = vadd.f32 %v771_v31, %v712_v29  ;;  %v772_v34 = vpop.f32.mrb[4].mxu1  ;;  %v714_v35 = vpop.f32.mrb[5].mxu0 }
 0x138   : > { %v715_v36 = vadd.f32 %v714_v35, %v713_v32  ;;  %v773_v37 = vpop.f32.mrb[5].mxu1 }
 0x139   : > { %932 = vtanh.f32 %v507_v33  ;;  %v774_v38 = vadd.f32 %v773_v37, %v772_v34 }
 0x13a   : > { %v716_v39 = vpop.f32.mrb[6].mxu0 }
 0x13b   : > { %v512_v40 = vadd.f32 %v774_v38, %v715_v36  ;;  %v775_v41 = vpop.f32.mrb[6].mxu1  ;;  %v717_v42 = vpop.f32.mrb[7].mxu0 }
 0x13c   : > { %v718_v43 = vadd.f32 %v717_v42, %v716_v39  ;;  %v776_v44 = vpop.f32.mrb[7].mxu1 }
 0x13d   : > { %934 = vtanh.f32 %v512_v40  ;;  %v777_v45 = vadd.f32 %v776_v44, %v775_v41 }
 0x13e   : > { %v719_v46 = vpop.f32.mrb[8].mxu0 }
 0x13f   : > { %v931_v47 = vpop.eup %930  ;;  %v517_v48 = vadd.f32 %v777_v45, %v718_v43  ;;  %v778_v49 = vpop.f32.mrb[8].mxu1 }
 0x140   : > { %v720_v50 = vpop.f32.mrb[9].mxu0  ;;  %554 = vst [vmem:[%s1219_s29] sm:$0xff] %v931_v47  ;;  %v779_v52 = vpop.f32.mrb[9].mxu1 }
 0x141   : > { %v721_v51 = vadd.f32 %v720_v50, %v719_v46  ;;  %936 = vtanh.f32 %v517_v48  ;;  %v780_v53 = vadd.f32 %v779_v52, %v778_v49 }
 0x142   : > { %v722_v54 = vpop.f32.mrb[10].mxu0 }
 0x143   : > { %v933_v55 = vpop.eup %932  ;;  %v522_v56 = vadd.f32 %v780_v53, %v721_v51  ;;  %v781_v57 = vpop.f32.mrb[10].mxu1 }
 0x144   : > { %v723_v58 = vpop.f32.mrb[11].mxu0  ;;  %555 = vst [vmem:[%s1219_s29 + $0x8] sm:$0xff] %v933_v55  ;;  %v782_v60 = vpop.f32.mrb[11].mxu1 }
 0x145   : > { %v724_v59 = vadd.f32 %v723_v58, %v722_v54  ;;  %938 = vtanh.f32 %v522_v56  ;;  %v783_v61 = vadd.f32 %v782_v60, %v781_v57 }
 0x146   : > { %v725_v62 = vpop.f32.mrb[12].mxu0 }
 0x147   : > { %v935_v63 = vpop.eup %934  ;;  %v527_v0 = vadd.f32 %v783_v61, %v724_v59  ;;  %v784_v1 = vpop.f32.mrb[12].mxu1 }
 0x148   : > { %v726_v2 = vpop.f32.mrb[13].mxu0  ;;  %556 = vst [vmem:[%s1219_s29 + $0x10] sm:$0xff] %v935_v63  ;;  %v785_v4 = vpop.f32.mrb[13].mxu1 }
 0x149   : > { %v727_v3 = vadd.f32 %v726_v2, %v725_v62  ;;  %940 = vtanh.f32 %v527_v0  ;;  %v786_v5 = vadd.f32 %v785_v4, %v784_v1 }
 0x14a   : > { %v728_v6 = vpop.f32.mrb[14].mxu0 }
 0x14b   : > { %v937_v7 = vpop.eup %936  ;;  %v532_v8 = vadd.f32 %v786_v5, %v727_v3  ;;  %v787_v9 = vpop.f32.mrb[14].mxu1 }
 0x14c   : > { %v729_v10 = vpop.f32.mrb[15].mxu0  ;;  %557 = vst [vmem:[%s1219_s29 + $0x18] sm:$0xff] %v937_v7  ;;  %v788_v12 = vpop.f32.mrb[15].mxu1 }
 0x14d   : > { %v730_v11 = vadd.f32 %v729_v10, %v728_v6  ;;  %942 = vtanh.f32 %v532_v8  ;;  %v789_v13 = vadd.f32 %v788_v12, %v787_v9 }
 0x14e   : > { %v731_v14 = vpop.f32.mrb[16].mxu0 }
 0x14f   : > { %v939_v15 = vpop.eup %938  ;;  %v537_v16 = vadd.f32 %v789_v13, %v730_v11  ;;  %v790_v17 = vpop.f32.mrb[16].mxu1 }
 0x150   : > { %v732_v18 = vpop.f32.mrb[17].mxu0  ;;  %558 = vst [vmem:[%s1219_s29 + $0x20] sm:$0xff] %v939_v15  ;;  %v791_v20 = vpop.f32.mrb[17].mxu1 }
 0x151   : > { %v733_v19 = vadd.f32 %v732_v18, %v731_v14  ;;  %944 = vtanh.f32 %v537_v16  ;;  %v792_v21 = vadd.f32 %v791_v20, %v790_v17 }
 0x153   : > { %v941_v22 = vpop.eup %940  ;;  %v542_v23 = vadd.f32 %v792_v21, %v733_v19 }
 0x154   : > { %559 = vst [vmem:[%s1219_s29 + $0x28] sm:$0xff] %v941_v22 }
 0x155   : > { %946 = vtanh.f32 %v542_v23 }
 0x157   : > { %v943_v24 = vpop.eup %942 }
 0x158   : > { %560 = vst [vmem:[%s1219_s29 + $0x30] sm:$0xff] %v943_v24 }
 0x15b   : > { %v945_v25 = vpop.eup %944 }
 0x15c   : > { %561 = vst [vmem:[%s1219_s29 + $0x38] sm:$0xff] %v945_v25 }
 0x15f   : > { %v947_v26 = vpop.eup %946 }
 0x160   : > { %562 = vst [vmem:[%s1219_s29 + $0x40] sm:$0xff] %v947_v26 }
 0x161   : > { %989 = shalt.err (!%p986_p6)
}
 0x162   : > { %s990_s18 = scalar_lea.hbm %s1234_s6, 1152  ;;  %s994_s24 = scalar_lea.hbm %s1289_s2, 2304 }
 0x163   : > { %p991_p7 = scmp.ne.s32.totalorder %s1234_s6, %s990_s18  ;;  %p995_p0 = scmp.lt.u32.totalorder %s1234_s6, %s1289_s2 }
 0x164   : > { %p996_p2 = scmp.lt.u32.totalorder %s994_s24, %s990_s18  ;;  %p998_p8 = scmp.lt.u32.totalorder %s990_s18, %s1234_s6 }
 0x165   : > { %p992_p9 = pnand %p991_p7, %p1301_p10 }
 0x166   : > { %p997_p4 = por %p996_p2, %p995_p0 }
 0x167   : > { %p993_p12 = pneg %p992_p9 }
 0x168   : > { %p999_p11 = por %p998_p8, %p997_p4 }
 0x16a   : > { %p1000_p13 = pnand %p999_p11, %p993_p12 }
 0x16c   : > { %1003 = shalt.err (!%p1000_p13)
}
 0x16d   : > { %s1064_s27 = smov 128   ;;  %s1065_s28 = smov 8  }
 0x16e   : > { %864 = dma.vmem_to_hbm [thread:$0]  (%p1301_p10), %s1236_s3, 1152, %s1234_s6, %s1241_s7, %s1064_s27, %s1064_s27, %s1065_s28  }
 0x16f PF: > { %p876_p1 = scmp.ge.s32.totalorder %s1058_s14, 2  ;;  %s593_s29 = sand.u32 1, %s1038_s9  }
 0x170   : > { %p1302_p3 = scmp.ne.s32.totalorder %s1295_s21, 0  ;;  %s594_s30 = scalar_lea.sflag [#allocation4], %s593_s29 }
 0x172   : > { %p871_p5 = pnand %p876_p1, %p1302_p3 }
 0x174   : > { %1033 = dma.done.wait (!%p871_p5), %s594_s30, 1152  }
 0x175   : > { %1035 = vsyncadd (!%p871_p5), %s594_s30, 4294966144  ;;  %s16_s14 = sadd.s32 1, %s1058_s14   ;;  %s1303_s9 = smov %s1042_s10 }
 0x176   : > { %p13_p6 = scmp.ge.s32.totalorder %s16_s14, 4   ;;  %s1304_s10 = smov %s1046_s11 }
 0x177   : > { %s1305_s11 = smov %s1134_s22  ;;  %s1306_s12 = smov %s1054_s13 }
 0x178   : > { %s1307_s13 = smov %s1309_s17  ;;  %15 = sbr.rel (!%p13_p6) target bundleno = 5 (0x5), region = 69 }
 0x17f   :  { %599 = vsyncpa [#allocation3], 1 }
 0x180   :  { %601 = vsyncpa [#allocation3 + $0x1], 1 }
 0x181   :  { %602 = vsyncpa [#allocation4], 1 }
 0x182   :  { %604 = vsyncpa [#allocation4 + $0x1], 1 }

</bundles_post_ra>
